<compile_context>
chip_gen: v6e
topology: v6e:2x2x1
jax: 0.10.0
libtpu: 0.0.40
codegen_flags: <defaults>
</compile_context>

<pallas_src>
import jax
import jax.numpy as jnp
from jax.experimental import pallas as pl
from jax.experimental.pallas import tpu as pltpu


def _focus_conv_kernel(x_ref, w_ref, b_ref, o_ref):
    """Fused (c2 x 12) @ (12 x tm) matmul + folded-BN bias + SiLU, pixels in lanes."""
    x = x_ref[0]                                                      # (12, tm)
    y = jnp.dot(w_ref[...], x, preferred_element_type=jnp.float32)    # (c2, tm) f32
    y = y + b_ref[...]                                                # (c2, 1) broadcast
    o_ref[0] = (y * jax.nn.sigmoid(y)).astype(o_ref.dtype)            # SiLU


def _pick_tile(m_pix, n_batch, max_tm=8192):
    """Pixel tile size satisfying TPU lane constraints.

    Big tiles (long DMAs, amortized per-step overhead), but for batch=1 keep at
    least two tiles so v7x's two TensorCores both get work.  Returned value is
    either the full pixel dim (exempt from the /128 rule) or a multiple of 128.
    """
    n_splits = 2 if n_batch == 1 else 1
    if m_pix <= 256 or (m_pix <= max_tm and n_splits == 1):
        return m_pix                       # single full-dim block per image
    cap = max(128, (m_pix // (128 * n_splits)) * 128)
    return min(max_tm, cap)


def gconv_focus_forward(x_nchw, conv_w, bn_gamma, bn_beta, bn_mean, bn_var,
                        eps=1e-5):
    N, C, H, W = x_nchw.shape
    assert C == 3 and H % 2 == 0 and W % 2 == 0
    c2 = conv_w.shape[0]
    H2, W2 = H // 2, W // 2
    m_pix = H2 * W2
    dtype = x_nchw.dtype
    dsize = jnp.dtype(dtype).itemsize

    # --- glue: space-to-depth straight from NCHW (== the 4 one-hot grouped convs).
    #     One fused slice+concat pass (torch cat order), reshape is free; the
    #     allow_input_fusion hint below lets XLA fold it into the operand DMA.
    tl = x_nchw[:, :, 0::2, 0::2]                      # conv1: [[1,0],[0,0]]
    bl = x_nchw[:, :, 1::2, 0::2]                      # conv2: [[0,0],[1,0]]
    tr = x_nchw[:, :, 0::2, 1::2]                      # conv3: [[0,1],[0,0]]
    br = x_nchw[:, :, 1::2, 1::2]                      # conv4: [[0,0],[0,1]]
    xm = jnp.concatenate([tl, bl, tr, br], axis=1).reshape(N, 4 * C, m_pix)

    # --- fold BatchNorm (eval mode) into the 1x1 conv weight / bias (f32 math) ---
    scale = bn_gamma.astype(jnp.float32) / jnp.sqrt(bn_var.astype(jnp.float32) + eps)
    w = (conv_w.reshape(c2, 4 * C).astype(jnp.float32)
         * scale[:, None]).astype(dtype)                               # (c2, 12)
    b = (bn_beta.astype(jnp.float32)
         - bn_mean.astype(jnp.float32) * scale).reshape(c2, 1)         # (c2, 1) f32

    tm = _pick_tile(m_pix, N)
    n_tiles = pl.cdiv(m_pix, tm)           # ragged tail handled by Pallas masking

    cost = pl.CostEstimate(
        flops=2 * N * c2 * 4 * C * m_pix,
        transcendentals=N * c2 * m_pix,
        bytes_accessed=(N * 4 * C * m_pix * dsize          # activations in
                        + N * c2 * m_pix * dsize           # activations out
                        + c2 * 4 * C * dsize + c2 * 4))    # weight + bias

    out = pl.pallas_call(
        _focus_conv_kernel,
        out_shape=jax.ShapeDtypeStruct((N, c2, m_pix), dtype),
        grid_spec=pltpu.PrefetchScalarGridSpec(
            num_scalar_prefetch=0,
            grid=(N, n_tiles),
            in_specs=[
                pl.BlockSpec((1, 4 * C, tm), lambda n, i: (n, 0, i)),  # pixel tile
                pl.BlockSpec((c2, 4 * C), lambda n, i: (0, 0)),        # folded weight (resident)
                pl.BlockSpec((c2, 1), lambda n, i: (0, 0)),            # folded bias (resident)
            ],
            out_specs=pl.BlockSpec((1, c2, tm), lambda n, i: (n, 0, i)),
        ),
        compiler_params=pltpu.CompilerParams(
            dimension_semantics=("parallel", "parallel"),
            allow_input_fusion=[True, False, False]),
        cost_estimate=cost,
    )(xm, w, b)

    return out.reshape(N, c2, H2, W2)                  # already NCHW: no transpose


def reference_forward(x, conv_w, gamma, beta, mean, var, eps=1e-5):
    """Literal plain-JAX translation of the PyTorch forward (for validation)."""
    def sel(r, c):
        w = jnp.zeros((3, 1, 2, 2), jnp.float32).at[:, :, r, c].set(1.0)
        return jax.lax.conv_general_dilated(
            x, w, window_strides=(2, 2), padding="VALID",
            dimension_numbers=("NCHW", "OIHW", "NCHW"),
            feature_group_count=3)
    cat = jnp.concatenate([sel(0, 0), sel(1, 0), sel(0, 1), sel(1, 1)], axis=1)
    y = jax.lax.conv_general_dilated(
        cat, conv_w, window_strides=(1, 1), padding="VALID",
        dimension_numbers=("NCHW", "OIHW", "NCHW"))
    scale = gamma / jnp.sqrt(var + eps)
    y = y * scale[None, :, None, None] + (beta - mean * scale)[None, :, None, None]
    return y * jax.nn.sigmoid(y)


if __name__ == "__main__":
    key = jax.random.PRNGKey(0)
    k1, k2, k3, k4, k5, k6 = jax.random.split(key, 6)

    N, C, H, W = 2, 3, 16, 16      # groups=3 grouped convs require 3 input channels
    c2 = 32                        # hidden width of the synthesized Focus conv

    x = jax.random.normal(k1, (N, C, H, W), jnp.float32)
    conv_w = 0.1 * jax.random.normal(k2, (c2, 4 * C, 1, 1), jnp.float32)
    gamma = 1.0 + 0.1 * jax.random.normal(k3, (c2,), jnp.float32)
    beta = 0.1 * jax.random.normal(k4, (c2,), jnp.float32)
    mean = 0.1 * jax.random.normal(k5, (c2,), jnp.float32)
    var = jnp.abs(jax.random.normal(k6, (c2,), jnp.float32)) + 0.5

    # 1) small image, single full-dim block per batch element
    out = jax.block_until_ready(
        gconv_focus_forward(x, conv_w, gamma, beta, mean, var))
    ref = reference_forward(x, conv_w, gamma, beta, mean, var)
    assert out.shape == (N, c2, H // 2, W // 2), out.shape
    assert jnp.allclose(out, ref, atol=1e-4, rtol=1e-4), float(
        jnp.max(jnp.abs(out - ref)))

    # 2) batch=1, multi-tile path: m_pix=2304 splits exactly into 2 tiles of 1152
    #    (keeps both v7x TensorCores busy).
    xb = jax.random.normal(k1, (1, C, 96, 96), jnp.float32)
    out_b = jax.block_until_ready(
        gconv_focus_forward(xb, conv_w, gamma, beta, mean, var))
    ref_b = reference_forward(xb, conv_w, gamma, beta, mean, var)
    assert out_b.shape == (1, c2, 48, 48), out_b.shape
    assert jnp.allclose(out_b, ref_b, atol=1e-4, rtol=1e-4), float(
        jnp.max(jnp.abs(out_b - ref_b)))

    # 3) ragged-tail path: m_pix=1600, tm=768 -> 3 tiles, last tile masked
    #    (no pre-padding pass anymore).
    xc = jax.random.normal(k2, (1, C, 80, 80), jnp.float32)
    out_c = jax.block_until_ready(
        gconv_focus_forward(xc, conv_w, gamma, beta, mean, var))
    ref_c = reference_forward(xc, conv_w, gamma, beta, mean, var)
    assert out_c.shape == (1, c2, 40, 40), out_c.shape
    assert jnp.allclose(out_c, ref_c, atol=1e-4, rtol=1e-4), float(
        jnp.max(jnp.abs(out_c - ref_c)))

    print("KERNEL_OK")
</pallas_src>

<mosaic_0001>
module attributes {stable_mosaic.version = 11 : i64} {
  func.func @_focus_conv_kernel(%arg0: i32, %arg1: i32, %arg2: memref<1x12x64xf32, #tpu.memory_space<vmem>>, %arg3: memref<32x12xf32, #tpu.memory_space<vmem>>, %arg4: memref<32x1xf32, #tpu.memory_space<vmem>>, %arg5: memref<1x32x64xf32, #tpu.memory_space<vmem>>) attributes {dimension_semantics = [#tpu.dimension_semantics<parallel>, #tpu.dimension_semantics<parallel>], iteration_bounds = array<i64: 2, 1>, scalar_prefetch = 0 : i64, scratch_operands = 0 : i64, tpu.core_type = #tpu.core_type<tc>, window_params = [{transform_indices = @transform_0, window_bounds = array<i64: 1, 12, 64>}, {pipeline_mode = #tpu.pipeline_mode<synchronous>, transform_indices = @transform_1, window_bounds = array<i64: 32, 12>}, {pipeline_mode = #tpu.pipeline_mode<synchronous>, transform_indices = @transform_2, window_bounds = array<i64: 32, 1>}, {transform_indices = @transform_3, window_bounds = array<i64: 1, 32, 64>}]} {
    %c0 = arith.constant 0 : index
    %c0_0 = arith.constant 0 : index
    %c0_1 = arith.constant 0 : index
    %0 = vector.load %arg2[%c0, %c0_0, %c0_1] : memref<1x12x64xf32, #tpu.memory_space<vmem>>, vector<1x12x64xf32>
    %1 = vector.shape_cast %0 : vector<1x12x64xf32> to vector<12x64xf32>
    %c0_2 = arith.constant 0 : index
    %c0_3 = arith.constant 0 : index
    %2 = vector.load %arg3[%c0_2, %c0_3] : memref<32x12xf32, #tpu.memory_space<vmem>>, vector<32x12xf32>
    %cst = arith.constant dense<0.000000e+00> : vector<32x64xf32>
    %3 = tpu.matmul %2, %1, %cst {dimension_numbers = #tpu.dot_dimension_numbers<[1], [0], [0], [1], [0, 0, 1, 1], [], []>} : vector<32x12xf32>, vector<12x64xf32>, vector<32x64xf32> -> vector<32x64xf32>
    %c0_4 = arith.constant 0 : index
    %c0_5 = arith.constant 0 : index
    %4 = vector.load %arg4[%c0_4, %c0_5] : memref<32x1xf32, #tpu.memory_space<vmem>>, vector<32x1xf32>
    %5 = vector.broadcast %4 : vector<32x1xf32> to vector<32x64xf32>
    %6 = arith.addf %3, %5 : vector<32x64xf32>
    %7 = arith.negf %6 : vector<32x64xf32>
    %8 = math.exp %7 : vector<32x64xf32>
    %cst_6 = arith.constant 1.000000e+00 : f32
    %9 = vector.broadcast %cst_6 : f32 to vector<32x64xf32>
    %10 = arith.addf %9, %8 : vector<32x64xf32>
    %11 = arith.divf %9, %10 : vector<32x64xf32>
    %12 = arith.mulf %6, %11 : vector<32x64xf32>
    %c0_7 = arith.constant 0 : index
    %c0_8 = arith.constant 0 : index
    %c0_9 = arith.constant 0 : index
    %13 = vector.load %arg5[%c0_7, %c0_8, %c0_9] : memref<1x32x64xf32, #tpu.memory_space<vmem>>, vector<1x32x64xf32>
    %14 = vector.shape_cast %13 : vector<1x32x64xf32> to vector<32x64xf32>
    %15 = vector.shape_cast %12 : vector<32x64xf32> to vector<1x32x64xf32>
    tpu.vector_store %arg5[%c0_7, %c0_8, %c0_9], %15 {strides = array<i32>} : memref<1x32x64xf32, #tpu.memory_space<vmem>>, vector<1x32x64xf32>,
    return
  }
  func.func @transform_0(%arg0: i32, %arg1: i32) -> (i32, i32, i32) {
    %c0_i32 = arith.constant 0 : i32
    %c0_i32_0 = arith.constant 0 : i32
    return %arg0, %c0_i32, %arg1 : i32, i32, i32
  }
  func.func @transform_1(%arg0: i32, %arg1: i32) -> (i32, i32) {
    %c0_i32 = arith.constant 0 : i32
    %c0_i32_0 = arith.constant 0 : i32
    %c0_i32_1 = arith.constant 0 : i32
    return %c0_i32, %c0_i32_0 : i32, i32
  }
  func.func @transform_2(%arg0: i32, %arg1: i32) -> (i32, i32) {
    %c0_i32 = arith.constant 0 : i32
    %c0_i32_0 = arith.constant 0 : i32
    %c0_i32_1 = arith.constant 0 : i32
    return %c0_i32, %c0_i32_0 : i32, i32
  }
  func.func @transform_3(%arg0: i32, %arg1: i32) -> (i32, i32, i32) {
    %c0_i32 = arith.constant 0 : i32
    %c0_i32_0 = arith.constant 0 : i32
    return %arg0, %c0_i32, %arg1 : i32, i32, i32
  }
}

</mosaic_0001>

<bundles_post_ra>
// kernel: tpu_custom_call.1
= control target key start
LH: loop header
LB: loop body
LE: loop exit
PB: predicated region body
PF: predicated region fallthrough
CT: control target
= control target key end

     0   :  { %8 = vsyncpa [#allocation3], 0  ;;  %s820_s0 = inlined_call_operand.vmem [shape: f32[2,12,64], index: 0, kind: input, shape index: {}]   ;;  %s821_s1 = inlined_call_operand.vmem [shape: f32[32,12], index: 1, kind: input, shape index: {}]   ;;  %s822_s2 = inlined_call_operand.vmem [shape: f32[32,1], index: 2, kind: input, shape index: {}]   ;;  %s823_s3 = inlined_call_operand.hbm [shape: f32[2,32,64], index: 3, kind: output, shape index: {}]  }
   0x1   :  { %10 = vsyncpa [#allocation3 + $0x1], 0  ;;  %s674_s12 = smov 0   ;;  %s676_s13 = smov 0  }
   0x2   :  { %s678_s14 = smov 0   ;;  %s680_s15 = smov 0  }
   0x3   :  { %s682_s16 = smov 0   ;;  %s684_s17 = smov 0  }
   0x4 LB: > { %s452_s18 = sadd.s32 4294967295, %s648_s17   ;;  %s453_s19 = sadd.s32 4294967294, %s648_s17   ;;  %s648_s17 = sphi %s684_s17, %s16_s17   ;;  %s644_s16 = sphi %s682_s16, %s830_s16   ;;  %s640_s15 = sphi %s680_s15, %s829_s15   ;;  %s636_s14 = sphi %s678_s14, %s828_s14   ;;  %s632_s13 = sphi %s676_s13, %s827_s13   ;;  %s628_s12 = sphi %s674_s12, %s826_s12  }
   0x5   : > { %s28_s20 = sadd.s32 1, %s644_s16  ;;  %s107_s21 = sadd.s32 1, %s636_s14 }
   0x6   : > { %p30_p0 = scmp.ge.s32.totalorder %s28_s20, 2  ;;  %p117_p1 = scmp.ne.s32.totalorder %s636_s14, %s632_s13 }
   0x7   : > { %p118_p2 = scmp.eq.s32.totalorder %s452_s18, 1  ;;  %p123_p3 = scmp.ne.s32.totalorder %s632_s13, %s628_s12 }
   0x8   : > { %s832_s20 = smov (%p30_p0, %s28_s20), 0  ;;  %p124_p5 = scmp.eq.s32.totalorder %s453_s19, 1 }
   0x9   : > { %p714_p4 = por %p118_p2, %p117_p1  ;;  %s102_s23 = ssub.s32 %s644_s16, %s832_s20 }
   0xa   : > { %p456_p6 = scmp.ge.s32.totalorder %s648_s17, 1  ;;  %p105_p7 = scmp.eq.s32.totalorder %s102_s23, 0 }
   0xb   : > { %p721_p8 = por %p124_p5, %p123_p3  ;;  %p159_p9 = scmp.lt.s32.totalorder %s648_s17, 3 }
   0xc   : > { %s727_s25 = scalar_select %p105_p7, %s636_s14, %s107_s21  }
   0xd   : > { %p160_p10 = pnand %p456_p6, %p159_p9 }
   0xe   : > { %p186_p11 = scmp.lt.s32.totalorder (!%p160_p10), %s640_s15, 1  ;;  %s183_s30 = sand.u32 (!%p160_p10), 1, %s632_s13  }
   0xf   : > { %163 = sbr.rel (%p160_p10) target bundleno = 275 (0x113), region = 32  ;;  %s457_s4 = sshll.u32 (!%p160_p10), %s183_s30, 5 }
  0x10   : > { %s185_s5 = scalar_lea.vmem (!%p160_p10), [#allocation2], %s457_s4  ;;  %s651_s18 = smov (!%p160_p10), [#allocation2]  }
  0x11   : > { %s374_s6 = sshll.u32 (!%p160_p10), %s185_s5, 4  ;;  %s576_s19 = sshll.u32 (!%p160_p10), %s651_s18, 4  ;;  %s770_s6 = int_to_ptr.vmem [resolvable:$true] %s374_s6  ;;  %s577_s19 = int_to_ptr.vmem [resolvable:$false] %s576_s19 }
  0x12   : > { %s578_s21 = scalar_lea.vmem (!%p160_p10), %s577_s19, 1024  ;;  %p579_p1 = scmp.lt.s32.totalorder (!%p160_p10), %s770_s6, %s577_s19 }
  0x14   : > { %v196_v0 = vld [vmem:[%s821_s1] sm:$0xff]  ;;  %vm224_vm0 = vcmask 97280   ;;  %v198_v1 = vld [vmem:[%s821_s1 + $0x10] sm:$0xff]  ;;  %s187_s7 = scalar_select %p186_p11, %s640_s15, 1  ;;  %v650_v4 = vmov 0   ;;  %vm237_vm1 = vcmask 1043456  }
  0x15   : > { %486 = vmatprep.mubr.msk.f32.mxu0 %vm224_vm0, %v196_v0  ;;  %489 = vmatprep.mubr.msk.f32.mxu1 %vm224_vm0, %v198_v1  ;;  %v202_v2 = vld [vmem:[%s822_s2 + $0x10] sm:$0xff]  ;;  %v200_v3 = vld [vmem:[%s822_s2] sm:$0xff]  ;;  %v197_v7 = vld [vmem:[%s821_s1 + $0x8] sm:$0xff]  ;;  %vm354_vm2 = vcmask 523264  }
  0x16   : > { %555 = vset.pattern.permute.xlu1 %v650_v4  ;;  %554 = vset.pattern.permute.xlu0 %v650_v4  ;;  %s474_s8 = sshll.u32 %s187_s7, 4  ;;  %v199_v8 = vld [vmem:[%s821_s1 + $0x18] sm:$0xff]  ;;  %v201_v10 = vld [vmem:[%s822_s2 + $0x8] sm:$0xff]  ;;  %s475_s7 = sshll.u32 %s640_s15, 9 }
  0x17   : > { %216 = vperm.xlu1 %555, %v202_v2   ;;  %206 = vperm.xlu0 %554, %v200_v3   ;;  %s193_s11 = scalar_lea.vmem %s820_s0, %s474_s8  ;;  %v203_v9 = vld [vmem:[%s822_s2 + $0x18] sm:$0xff]  ;;  %s768_s10 = scalar_lea.hbm %s823_s3, %s475_s7 }
  0x18   : > { %v195_v5 = vld [vmem:[%s193_s11 + $0x8] sm:$0xf]  ;;  %v194_v6 = vld [vmem:[%s193_s11] sm:$0xff]  ;;  %s775_s15 = scalar_lea.sflag [#allocation3], %s183_s30  ;;  %s572_s11 = scalar_lea.vmem %s770_s6, 512 }
  0x19   : > { %482 = vmatprep.subr.msk.mxu0 %vm237_vm1, %v195_v5  ;;  %492 = vmatprep.subr.msk.mxu1 %vm237_vm1, %v195_v5  ;;  %p573_p12 = scmp.ne.s32.totalorder %s770_s6, %s572_s11  ;;  %p580_p2 = scmp.lt.s32.totalorder %s578_s21, %s572_s11 }
  0x1a   : > { %483 = vmatpush3.msk.msra.mxu0 %vm237_vm1, %v195_v5  ;;  %494 = vmatpush3.msk.msra.mxu1 %vm237_vm1, %v195_v5 }
  0x1b   : > { %484 = vmatprep.subr.mxu0 %v194_v6  ;;  %493 = vmatprep.subr.mxu1 %v194_v6  ;;  %p574_p13 = pnand %p573_p12, %p714_p4  ;;  %p581_p3 = por %p580_p2, %p579_p1 }
  0x1c   : > { %485 = vmatpush3.msra.mxu0 %v194_v6  ;;  %495 = vmatpush3.msra.mxu1 %v194_v6 }
  0x1d   : > { %487 = vmatmul.mubr.msk.f32.vlgmr.msra.gmra.mxu0 %vm224_vm0, %v197_v7  ;;  %490 = vmatmul.mubr.msk.f32.vlgmr.msra.gmra.mxu1 %vm224_vm0, %v199_v8  ;;  %p575_p0 = pneg %p574_p13 }
  0x1e   : > { %221 = vperm.xlu1 %555, %v203_v9   ;;  %211 = vperm.xlu0 %554, %v201_v10  }
  0x1f   : > { %p582_p5 = pnand %p581_p3, %p575_p0 }
  0x92   : > { %v217_v11 = vpop.permute.xlu1 %216  ;;  %v207_v12 = vpop.permute.xlu0 %206 }
  0x99   : > { %v222_v13 = vpop.permute.xlu1 %221  ;;  %v212_v14 = vpop.permute.xlu0 %211 }
  0xdd   : > { %v488_v15 = vpop.f32.mrf.mxu0  ;;  %v491_v16 = vpop.f32.mrf.mxu1 }
  0xde   : > { %v313_v17 = vadd.f32 %v488_v15, %v212_v14  ;;  %v323_v18 = vadd.f32 %v491_v16, %v222_v13 }
  0xdf   : > { %v307_v19 = vpop.f32.mrf.mxu0  ;;  %v317_v20 = vpop.f32.mrf.mxu1 }
  0xe0   : > { %v466_v21 = vmul.f32 -1.442695, %v313_v17  ;;  %v468_v22 = vmul.f32 -1.442695, %v323_v18  ;;  %v308_v23 = vadd.f32 %v307_v19, %v207_v12  ;;  %v318_v24 = vadd.f32 %v317_v20, %v217_v11 }
  0xe2   : > { %556 = vpow2.f32 %v466_v21  ;;  %v465_v25 = vmul.f32 -1.442695, %v308_v23  ;;  %v467_v26 = vmul.f32 -1.442695, %v318_v24 }
  0xe3   : > { %558 = vpow2.f32 %v468_v22 }
  0xe4   : > { %560 = vpow2.f32 %v465_v25 }
  0xe5   : > { %562 = vpow2.f32 %v467_v26 }
  0xef   : > { %v557_v27 = vpop.eup %556 }
  0xf0   : > { %v559_v28 = vpop.eup %558  ;;  %v339_v29 = vadd.f32 1.0, %v557_v27 }
  0xf1   : > { %v561_v30 = vpop.eup %560  ;;  %v341_v31 = vadd.f32 1.0, %v559_v28 }
  0xf2   : > { %v563_v32 = vpop.eup %562  ;;  %564 = vrcp.f32 %v339_v29  ;;  %v338_v33 = vadd.f32 1.0, %v561_v30 }
  0xf3   : > { %566 = vrcp.f32 %v341_v31  ;;  %v340_v34 = vadd.f32 1.0, %v563_v32 }
  0xf4   : > { %568 = vrcp.f32 %v338_v33 }
  0xf5   : > { %570 = vrcp.f32 %v340_v34 }
  0xff   : > { %v565_v35 = vpop.eup %564 }
 0x100   : > { %v567_v36 = vpop.eup %566  ;;  %v351_v37 = vmul.f32 %v565_v35, %v313_v17 }
 0x101   : > { %v569_v38 = vpop.eup %568  ;;  %v353_v39 = vmul.f32 %v567_v36, %v323_v18 }
 0x102   : > { %v571_v40 = vpop.eup %570  ;;  %356 = vst.msk [vmem:[%s185_s5 + $0x8] sm:$0xff] %vm354_vm2, %v351_v37  ;;  %v350_v41 = vmul.f32 %v569_v38, %v308_v23 }
 0x103   : > { %358 = vst.msk [vmem:[%s185_s5 + $0x18] sm:$0xff] %vm354_vm2, %v353_v39  ;;  %v352_v42 = vmul.f32 %v571_v40, %v318_v24 }
 0x104   : > { %355 = vst.msk [vmem:[%s185_s5] sm:$0xff] %vm354_vm2, %v350_v41 }
 0x105   : > { %357 = vst.msk [vmem:[%s185_s5 + $0x10] sm:$0xff] %vm354_vm2, %v352_v42 }
 0x106   : > { %585 = shalt.err (!%p582_p5)
}
 0x107   : > { %s586_s23 = scalar_lea.hbm %s768_s10, 512  ;;  %s590_s28 = scalar_lea.hbm %s823_s3, 1024 }
 0x108   : > { %p587_p6 = scmp.ne.s32.totalorder %s768_s10, %s586_s23  ;;  %p591_p10 = scmp.lt.s32.totalorder %s768_s10, %s823_s3 }
 0x109   : > { %p592_p11 = scmp.lt.s32.totalorder %s590_s28, %s586_s23 }
 0x10a   : > { %p588_p7 = pnand %p587_p6, %p714_p4 }
 0x10b   : > { %p593_p12 = por %p592_p11, %p591_p10 }
 0x10c   : > { %p589_p9 = pneg %p588_p7 }
 0x10e   : > { %p594_p13 = pnand %p593_p12, %p589_p9 }
 0x110   : > { %597 = shalt.err (!%p594_p13)
}
 0x111   : > { %s652_s4 = smov 128   ;;  %s653_s5 = smov 8  }
 0x112   : > { %496 = dma.vmem_to_hbm [thread:$0]  (%p714_p4), %s770_s6, 512, %s768_s10, %s775_s15, %s652_s4, %s652_s4, %s653_s5  }
 0x113 PF: > { %p502_p0 = scmp.ge.s32.totalorder %s648_s17, 2  ;;  %s389_s7 = sand.u32 1, %s628_s12  }
 0x114   : > { %s390_s8 = scalar_lea.sflag [#allocation3], %s389_s7 }
 0x115   : > { %p499_p1 = pnand %p502_p0, %p721_p8 }
 0x117   : > { %p500_p2 = pneg %p499_p1 }
 0x119   : > { %623 = dma.done.wait (%p500_p2), %s390_s8, 512  }
 0x11a   : > { %625 = vsyncadd (%p500_p2), %s390_s8, 4294966784  ;;  %s16_s17 = sadd.s32 1, %s648_s17   ;;  %s826_s12 = smov %s632_s13 }
 0x11b   : > { %p13_p3 = scmp.ge.s32.totalorder %s16_s17, 4   ;;  %s827_s13 = smov %s636_s14 }
 0x11c   : > { %s828_s14 = smov %s727_s25  ;;  %s829_s15 = smov %s644_s16 }
 0x11d   : > { %s830_s16 = smov %s832_s20  ;;  %15 = sbr.rel (!%p13_p3) target bundleno = 4 (0x4), region = 67 }
 0x122   :  { %395 = vsyncpa [#allocation3], 1 }
 0x123   :  { %397 = vsyncpa [#allocation3 + $0x1], 1 }

</bundles_post_ra>
